<compile_context>
chip_gen: v5e
topology: v5e:2x2
jax: 0.10.0
libtpu: 0.0.40
codegen_flags: <defaults>
</compile_context>

<pallas_src>
import functools

import jax
import jax.numpy as jnp
from jax.experimental import pallas as pl
from jax.experimental.pallas import tpu as pltpu


def _round_up(x, m):
    return -(-x // m) * m


def _round_down8(x):
    return max(8, (x // 8) * 8)


def _vmem_budget_bytes():
    """~75% of per-core VMEM (96 MiB on 128 MiB v5e/v6e, 48 MiB on 64 MiB v7x),
    leaving headroom for compiler-internal scratch/semaphores."""
    cap = 64 << 20  # conservative fallback (v7x per-TensorCore VMEM)
    try:
        info = pltpu.get_tpu_info()
        cap = int(getattr(info, "vmem_capacity_bytes", cap)) or cap
    except Exception:
        pass
    return max(32 << 20, (cap * 3) // 4)


def _pick_tn(dffp, cap):
    """Largest 128-multiple divisor of dffp that is <= cap (no dead-FLOP padding)."""
    n = dffp // 128
    best = 128
    for d in range(1, n + 1):
        if n % d == 0:
            cand = d * 128
            if best < cand <= cap:
                best = cand
    return best


def _keep_mask(shape, seed, row_off, col_off, n_cols, rate):
    """Counter-based hash PRNG keep mask. Portable (pure jnp uint32 ops, lowers
    on TPU and in interpret mode). Keep-prob = 1 - rate, inverted-dropout style.
    TODO(synk): matches torch dropout in distribution, not bit-for-bit mask."""
    rows = jax.lax.broadcasted_iota(jnp.int32, shape, 0) + row_off
    cols = jax.lax.broadcasted_iota(jnp.int32, shape, 1) + col_off
    v = (rows * n_cols + cols).astype(jnp.uint32)
    v = v * jnp.uint32(0x9E3779B1) + jnp.uint32(seed & 0xFFFFFFFF)
    v = (v ^ (v >> 16)) * jnp.uint32(0x7FEB352D)
    v = (v ^ (v >> 15)) * jnp.uint32(0x846CA68B)
    v = v ^ (v >> 16)
    threshold = jnp.uint32(min(int(rate * (2.0 ** 32)), (1 << 32) - 1))
    return v >= threshold


def _ffn_kernel_resident(x_ref, w1_ref, b1_ref, w2_ref, b2_ref, o_ref, *,
                         dropout_rate, training, seed, tm, dffp):
    """Weights-resident fast path: W1/W2/b1/b2 have constant index_maps (DMA'd
    once), the grid only walks row tiles, no reduction accumulator needed."""
    h = jnp.dot(x_ref[...], w1_ref[...], preferred_element_type=jnp.float32)
    h = jnp.maximum(h + b1_ref[...].astype(jnp.float32), 0.0)
    if training and dropout_rate > 0.0:
        keep = _keep_mask(h.shape, seed, pl.program_id(0) * tm, 0, dffp,
                          dropout_rate)
        h = jnp.where(keep, h, jnp.float32(0.0))
    out = jnp.dot(h.astype(w2_ref.dtype), w2_ref[...],
                  preferred_element_type=jnp.float32)
    if training and dropout_rate > 0.0:
        # dropout scale hoisted out of the per-element h path
        out = out * jnp.float32(1.0 / (1.0 - dropout_rate))
    o_ref[...] = (out + b2_ref[...].astype(jnp.float32)).astype(o_ref.dtype)


def _ffn_kernel_tiled(x_ref, w1_ref, b1_ref, w2_ref, b2_ref, o_ref, *scratch,
                      dropout_rate, training, seed, tm, tn, dffp):
    """Weight-streaming path: dff tiled (reduction axis innermost). fc2 partial
    products accumulate directly into the resident f32 output tile when the
    output dtype is f32; otherwise into an f32 VMEM scratch."""
    acc_ref = scratch[0] if scratch else o_ref
    j = pl.program_id(1)

    h = jnp.dot(x_ref[...], w1_ref[...], preferred_element_type=jnp.float32)
    h = jnp.maximum(h + b1_ref[...].astype(jnp.float32), 0.0)
    if training and dropout_rate > 0.0:
        keep = _keep_mask(h.shape, seed, pl.program_id(0) * tm, j * tn, dffp,
                          dropout_rate)
        h = jnp.where(keep, h, jnp.float32(0.0))

    partial = jnp.dot(h.astype(w2_ref.dtype), w2_ref[...],
                      preferred_element_type=jnp.float32)

    @pl.when(j == 0)
    def _():
        acc_ref[...] = partial

    @pl.when(j > 0)
    def _():
        acc_ref[...] += partial

    @pl.when(j == pl.num_programs(1) - 1)
    def _():
        out = acc_ref[...]
        if training and dropout_rate > 0.0:
            out = out * jnp.float32(1.0 / (1.0 - dropout_rate))  # hoisted scale
        o_ref[...] = (out + b2_ref[...].astype(jnp.float32)).astype(o_ref.dtype)


def prepare_params(w1, b1, w2, b2, *, weights_dtype=None):
    """Pad weights/biases to 128-lane multiples ONCE (not per forward call).
    `weights_dtype=jnp.bfloat16` is the opt-in MXU-native mixed-precision path."""
    d_model, dff = w1.shape
    dp, dffp = _round_up(d_model, 128), _round_up(dff, 128)
    wdt = weights_dtype if weights_dtype is not None else w1.dtype
    w1p = jnp.pad(w1.astype(wdt), ((0, dp - d_model), (0, dffp - dff)))
    b1p = jnp.pad(b1, (0, dffp - dff)).reshape(1, dffp)
    w2p = jnp.pad(w2.astype(wdt), ((0, dffp - dff), (0, dp - d_model)))
    b2p = jnp.pad(b2, (0, dp - d_model)).reshape(1, dp)
    return dict(w1=w1p, b1=b1p, w2=w2p, b2=b2p, d_model=d_model, dff=dff)


def feed_forward(x, params, *, dropout_rate=0.1, training=False, seed=0,
                 block_m=1024, block_n=1024, force_tiled=False):
    """y = fc2(dropout(relu(fc1(x)))) with x: (..., d_model)."""
    d_model = params["d_model"]
    w1p, b1p, w2p, b2p = params["w1"], params["b1"], params["w2"], params["b2"]
    dp, dffp = w1p.shape
    assert x.shape[-1] == d_model
    orig_shape = x.shape
    out_dtype = x.dtype
    x2 = x.reshape(-1, d_model)
    # opt-in mixed precision: if weights were prepared in bf16, feed bf16 x tiles
    if w1p.dtype == jnp.bfloat16 and x2.dtype == jnp.float32:
        x2 = x2.astype(jnp.bfloat16)
    M = x2.shape[0]
    Mp0 = _round_up(max(M, 1), 8)

    ib_x = jnp.dtype(x2.dtype).itemsize
    ib_o = jnp.dtype(out_dtype).itemsize
    ib_w = jnp.dtype(w1p.dtype).itemsize
    ib_b = jnp.dtype(b1p.dtype).itemsize
    budget = _vmem_budget_bytes()

    # big row tile is the primary knob (raises FLOPs/byte on the weight stream)
    tm_req = _round_up(max(8, min(block_m, Mp0)), 8)

    # ---- weights-resident fast path feasibility (weights DMA'd exactly once) ---
    w_bytes = 2 * dp * dffp * ib_w + (dffp + dp) * ib_b
    per_row_res = 2 * dp * (ib_x + ib_o) + dffp * 4 + dp * 4
    tm_cap_res = (budget - 2 * w_bytes) // per_row_res if 2 * w_bytes < budget else 0
    use_resident = (not force_tiled) and tm_cap_res >= min(Mp0, 128)

    if use_resident:
        # keep >= 2 row tiles so both v7x TensorCores get work on the parallel
        # axis (free here: weights are loaded once regardless of grid_m)
        if Mp0 // tm_req < 2 and Mp0 >= 16:
            tm_req = _round_up(-(-Mp0 // 2), 8)
        tm = min(tm_req, _round_down8(tm_cap_res))
        tn = dffp
    else:
        tn = _pick_tn(dffp, block_n)
        needs_scratch = out_dtype != jnp.float32
        per_row_t = 2 * dp * (ib_x + ib_o) + tn * 4 + (dp * 4 if needs_scratch else 0)
        fixed_t = 2 * (2 * dp * tn * ib_w + (tn + dp) * ib_b)
        tm_cap_t = (budget - fixed_t) // per_row_t if fixed_t < budget else 8
        tm = min(tm_req, _round_down8(max(tm_cap_t, 8)))

    grid_m = -(-Mp0 // tm)
    Mp = grid_m * tm

    pad_r, pad_c = Mp - M, dp - d_model
    x_p = jnp.pad(x2, ((0, pad_r), (0, pad_c))) if (pad_r or pad_c) else x2

    flops = 2 * 2 * Mp * dffp * dp  # fc1 + fc2

    if use_resident:
        kernel = functools.partial(
            _ffn_kernel_resident, dropout_rate=float(dropout_rate),
            training=bool(training), seed=int(seed), tm=tm, dffp=dffp)
        grid = (grid_m,)
        in_specs = [
            pl.BlockSpec((tm, dp), lambda i: (i, 0)),      # x row tile
            pl.BlockSpec((dp, dffp), lambda i: (0, 0)),    # W1 (resident)
            pl.BlockSpec((1, dffp), lambda i: (0, 0)),     # b1 (resident)
            pl.BlockSpec((dffp, dp), lambda i: (0, 0)),    # W2 (resident)
            pl.BlockSpec((1, dp), lambda i: (0, 0)),       # b2 (resident)
        ]
        out_specs = pl.BlockSpec((tm, dp), lambda i: (i, 0))
        scratch_shapes = []
        dim_sem = ("parallel",)
        bytes_accessed = Mp * dp * (ib_x + ib_o) + w_bytes
    else:
        kernel = functools.partial(
            _ffn_kernel_tiled, dropout_rate=float(dropout_rate),
            training=bool(training), seed=int(seed), tm=tm, tn=tn, dffp=dffp)
        grid = (grid_m, dffp // tn)
        in_specs = [
            pl.BlockSpec((tm, dp), lambda i, j: (i, 0)),   # x row tile
            pl.BlockSpec((dp, tn), lambda i, j: (0, j)),   # W1 column tile
            pl.BlockSpec((1, tn), lambda i, j: (0, j)),    # b1 tile
            pl.BlockSpec((tn, dp), lambda i, j: (j, 0)),   # W2 row tile
            pl.BlockSpec((1, dp), lambda i, j: (0, 0)),    # b2
        ]
        out_specs = pl.BlockSpec((tm, dp), lambda i, j: (i, 0))
        scratch_shapes = ([pltpu.VMEM((tm, dp), jnp.float32)]
                          if out_dtype != jnp.float32 else [])
        dim_sem = ("parallel", "arbitrary")
        bytes_accessed = Mp * dp * (ib_x + ib_o) + grid_m * w_bytes

    out = pl.pallas_call(
        kernel,
        out_shape=jax.ShapeDtypeStruct((Mp, dp), out_dtype),
        grid_spec=pltpu.PrefetchScalarGridSpec(
            num_scalar_prefetch=0, grid=grid, in_specs=in_specs,
            out_specs=out_specs, scratch_shapes=scratch_shapes),
        compiler_params=pltpu.CompilerParams(
            dimension_semantics=dim_sem, vmem_limit_bytes=int(budget)),
        cost_estimate=pl.CostEstimate(flops=int(flops), transcendentals=0,
                                      bytes_accessed=int(bytes_accessed)),
    )(x_p, w1p, b1p, w2p, b2p)

    return out[:M, :d_model].reshape(orig_shape)


def init_params(key, d_model, dff, dtype=jnp.float32):
    """Deterministic init mimicking nn.Linear's U(-1/sqrt(in), 1/sqrt(in))."""
    k1, k2, k3, k4 = jax.random.split(key, 4)
    bound1 = 1.0 / (d_model ** 0.5)
    bound2 = 1.0 / (dff ** 0.5)
    # stored already transposed: (in_features, out_features)
    w1 = jax.random.uniform(k1, (d_model, dff), dtype, -bound1, bound1)
    b1 = jax.random.uniform(k2, (dff,), dtype, -bound1, bound1)
    w2 = jax.random.uniform(k3, (dff, d_model), dtype, -bound2, bound2)
    b2 = jax.random.uniform(k4, (d_model,), dtype, -bound2, bound2)
    return w1, b1, w2, b2


if __name__ == "__main__":
    # small shapes implied by the module: batch=2, seq=8, d_model=32, dff=64
    B, S, D_MODEL, DFF = 2, 8, 32, 64
    key = jax.random.PRNGKey(0)
    kx, kp, kx2, kp2 = jax.random.split(key, 4)

    x = jax.random.normal(kx, (B, S, D_MODEL), jnp.float32)
    w1, b1, w2, b2 = init_params(kp, D_MODEL, DFF)
    params = prepare_params(w1, b1, w2, b2)          # pad once, reuse every call

    ref = (jnp.maximum(x.reshape(-1, D_MODEL) @ w1 + b1, 0.0) @ w2 + b2)
    ref = ref.reshape(B, S, D_MODEL)

    # 1) eval-mode forward, weights-resident fast path
    out = jax.block_until_ready(feed_forward(x, params, dropout_rate=0.1,
                                             training=False))
    assert out.shape == (B, S, D_MODEL)
    assert jnp.allclose(out, ref, atol=3e-2, rtol=3e-2)

    # 2) eval-mode forward through the weight-streaming (tiled) path
    out_t = jax.block_until_ready(feed_forward(x, params, training=False,
                                               force_tiled=True, block_n=128))
    assert jnp.allclose(out_t, ref, atol=3e-2, rtol=3e-2)

    # 3) tiled path with a real reduction over multiple dff tiles (grid_n > 1)
    D2, F2 = 64, 384
    x2 = jax.random.normal(kx2, (4, 16, D2), jnp.float32)
    w1b, b1b, w2b, b2b = init_params(kp2, D2, F2)
    params2 = prepare_params(w1b, b1b, w2b, b2b)
    ref2 = (jnp.maximum(x2.reshape(-1, D2) @ w1b + b1b, 0.0) @ w2b + b2b)
    ref2 = ref2.reshape(4, 16, D2)
    out2 = jax.block_until_ready(feed_forward(x2, params2, training=False,
                                              force_tiled=True, block_n=128))
    assert jnp.allclose(out2, ref2, atol=3e-2, rtol=3e-2)

    # 4) opt-in bf16 mixed precision (exercises the f32-scratch accumulator path)
    params_bf = prepare_params(w1, b1, w2, b2, weights_dtype=jnp.bfloat16)
    out_bf = jax.block_until_ready(
        feed_forward(x.astype(jnp.bfloat16), params_bf, training=False,
                     force_tiled=True, block_n=128))
    assert out_bf.dtype == jnp.bfloat16
    assert jnp.allclose(out_bf.astype(jnp.float32), ref, atol=1e-1, rtol=1e-1)

    # 5) training-mode dropout path (distributional, not bit-exact vs torch)
    out_tr = jax.block_until_ready(feed_forward(x, params, dropout_rate=0.1,
                                                training=True, seed=42))
    assert out_tr.shape == (B, S, D_MODEL)
    assert bool(jnp.isfinite(out_tr).all())

    print("KERNEL_OK")
</pallas_src>

<mosaic_0001>
module attributes {stable_mosaic.version = 11 : i64} {
  func.func @_ffn_kernel_resident(%arg0: i32, %arg1: memref<8x128xf32, #tpu.memory_space<vmem>>, %arg2: memref<128x128xf32, #tpu.memory_space<vmem>>, %arg3: memref<1x128xf32, #tpu.memory_space<vmem>>, %arg4: memref<128x128xf32, #tpu.memory_space<vmem>>, %arg5: memref<1x128xf32, #tpu.memory_space<vmem>>, %arg6: memref<8x128xf32, #tpu.memory_space<vmem>>) attributes {dimension_semantics = [#tpu.dimension_semantics<parallel>], iteration_bounds = array<i64: 2>, scalar_prefetch = 0 : i64, scratch_operands = 0 : i64, tpu.core_type = #tpu.core_type<tc>, window_params = [{transform_indices = @transform_0, window_bounds = array<i64: 8, 128>}, {pipeline_mode = #tpu.pipeline_mode<synchronous>, transform_indices = @transform_1, window_bounds = array<i64: 128, 128>}, {pipeline_mode = #tpu.pipeline_mode<synchronous>, transform_indices = @transform_2, window_bounds = array<i64: 1, 128>}, {pipeline_mode = #tpu.pipeline_mode<synchronous>, transform_indices = @transform_3, window_bounds = array<i64: 128, 128>}, {pipeline_mode = #tpu.pipeline_mode<synchronous>, transform_indices = @transform_4, window_bounds = array<i64: 1, 128>}, {transform_indices = @transform_5, window_bounds = array<i64: 8, 128>}]} {
    %c0 = arith.constant 0 : index
    %c0_0 = arith.constant 0 : index
    %0 = vector.load %arg1[%c0, %c0_0] : memref<8x128xf32, #tpu.memory_space<vmem>>, vector<8x128xf32>
    %c0_1 = arith.constant 0 : index
    %c0_2 = arith.constant 0 : index
    %1 = vector.load %arg2[%c0_1, %c0_2] : memref<128x128xf32, #tpu.memory_space<vmem>>, vector<128x128xf32>
    %cst = arith.constant dense<0.000000e+00> : vector<8x128xf32>
    %2 = tpu.matmul %0, %1, %cst {dimension_numbers = #tpu.dot_dimension_numbers<[1], [0], [0], [1], [0, 0, 1, 1], [], []>} : vector<8x128xf32>, vector<128x128xf32>, vector<8x128xf32> -> vector<8x128xf32>
    %c0_3 = arith.constant 0 : index
    %c0_4 = arith.constant 0 : index
    %3 = vector.load %arg3[%c0_3, %c0_4] : memref<1x128xf32, #tpu.memory_space<vmem>>, vector<1x128xf32>
    %4 = vector.broadcast %3 : vector<1x128xf32> to vector<8x128xf32>
    %5 = arith.addf %2, %4 : vector<8x128xf32>
    %cst_5 = arith.constant 0.000000e+00 : f32
    %6 = vector.broadcast %cst_5 : f32 to vector<8x128xf32>
    %7 = arith.maximumf %5, %6 : vector<8x128xf32>
    %c0_6 = arith.constant 0 : index
    %c0_7 = arith.constant 0 : index
    %8 = vector.load %arg4[%c0_6, %c0_7] : memref<128x128xf32, #tpu.memory_space<vmem>>, vector<128x128xf32>
    %cst_8 = arith.constant dense<0.000000e+00> : vector<8x128xf32>
    %9 = tpu.matmul %7, %8, %cst_8 {dimension_numbers = #tpu.dot_dimension_numbers<[1], [0], [0], [1], [0, 0, 1, 1], [], []>} : vector<8x128xf32>, vector<128x128xf32>, vector<8x128xf32> -> vector<8x128xf32>
    %c0_9 = arith.constant 0 : index
    %c0_10 = arith.constant 0 : index
    %10 = vector.load %arg5[%c0_9, %c0_10] : memref<1x128xf32, #tpu.memory_space<vmem>>, vector<1x128xf32>
    %11 = vector.broadcast %10 : vector<1x128xf32> to vector<8x128xf32>
    %12 = arith.addf %9, %11 : vector<8x128xf32>
    %c0_11 = arith.constant 0 : index
    %c0_12 = arith.constant 0 : index
    %13 = vector.load %arg6[%c0_11, %c0_12] : memref<8x128xf32, #tpu.memory_space<vmem>>, vector<8x128xf32>
    tpu.vector_store %arg6[%c0_11, %c0_12], %12 {strides = array<i32>} : memref<8x128xf32, #tpu.memory_space<vmem>>, vector<8x128xf32>,
    return
  }
  func.func @transform_0(%arg0: i32) -> (i32, i32) {
    %c0_i32 = arith.constant 0 : i32
    %c0_i32_0 = arith.constant 0 : i32
    return %arg0, %c0_i32 : i32, i32
  }
  func.func @transform_1(%arg0: i32) -> (i32, i32) {
    %c0_i32 = arith.constant 0 : i32
    %c0_i32_0 = arith.constant 0 : i32
    %c0_i32_1 = arith.constant 0 : i32
    return %c0_i32, %c0_i32_0 : i32, i32
  }
  func.func @transform_2(%arg0: i32) -> (i32, i32) {
    %c0_i32 = arith.constant 0 : i32
    %c0_i32_0 = arith.constant 0 : i32
    %c0_i32_1 = arith.constant 0 : i32
    return %c0_i32, %c0_i32_0 : i32, i32
  }
  func.func @transform_3(%arg0: i32) -> (i32, i32) {
    %c0_i32 = arith.constant 0 : i32
    %c0_i32_0 = arith.constant 0 : i32
    %c0_i32_1 = arith.constant 0 : i32
    return %c0_i32, %c0_i32_0 : i32, i32
  }
  func.func @transform_4(%arg0: i32) -> (i32, i32) {
    %c0_i32 = arith.constant 0 : i32
    %c0_i32_0 = arith.constant 0 : i32
    %c0_i32_1 = arith.constant 0 : i32
    return %c0_i32, %c0_i32_0 : i32, i32
  }
  func.func @transform_5(%arg0: i32) -> (i32, i32) {
    %c0_i32 = arith.constant 0 : i32
    %c0_i32_0 = arith.constant 0 : i32
    return %arg0, %c0_i32 : i32, i32
  }
}

</mosaic_0001>

<bundles_post_ra>
// kernel: tpu_custom_call.1
= control target key start
LH: loop header
LB: loop body
LE: loop exit
PB: predicated region body
PF: predicated region fallthrough
CT: control target
= control target key end

     0   :  { %10 = vsyncpa [#allocation3], 0  ;;  %s904_s0 = inlined_call_operand.hbm [shape: f32[16,128], index: 0, kind: input, shape index: {}]   ;;  %s905_s1 = inlined_call_operand.hbm [shape: f32[128,128], index: 1, kind: input, shape index: {}]   ;;  %s906_s2 = inlined_call_operand.vmem [shape: f32[1,128], index: 2, kind: input, shape index: {}]   ;;  %s907_s3 = inlined_call_operand.hbm [shape: f32[128,128], index: 3, kind: input, shape index: {}]   ;;  %s908_s4 = inlined_call_operand.vmem [shape: f32[1,128], index: 4, kind: input, shape index: {}]   ;;  %s909_s5 = inlined_call_operand.hbm [shape: f32[16,128], index: 5, kind: output, shape index: {}]  }
   0x1   :  { %12 = vsyncpa [#allocation3 + $0x1], 0 }
   0x2   :  { %13 = vsyncpa [#allocation6], 0 }
   0x3   :  { %14 = vsyncpa [#allocation4], 0 }
   0x4   :  { %16 = vsyncpa [#allocation4 + $0x1], 0  ;;  %s746_s18 = smov 0   ;;  %s748_s19 = smov 0  }
   0x5   :  { %s750_s20 = smov 0   ;;  %s752_s21 = smov 0  }
   0x6 LB: > { %s174_s24 = sshll.u32 %s905_s1, 4  ;;  %s770_s25 = sadd.s32 4294967295, %s710_s21   ;;  %s710_s21 = sphi %s752_s21, %s920_s21   ;;  %s706_s20 = sphi %s750_s20, %s919_s20   ;;  %s702_s19 = sphi %s748_s19, %s918_s19   ;;  %s698_s18 = sphi %s746_s18, %s917_s18   ;;  %s175_s24 = int_to_ptr.hbm [resolvable:$true] %s174_s24 }
   0x7   : > { %p464_p0 = scmp.ge.s32.totalorder %s710_s21, 1  ;;  %p43_p1 = scmp.eq.s32.totalorder %s770_s25, 0 }
   0x8   : > { %p163_p2 = scmp.lt.s32.totalorder %s710_s21, 3  ;;  %s712_s27 = smov [#allocation5]  }
   0x9   : > { %s176_s28 = sshll.u32 %s712_s27, 4  ;;  %s191_s6 = sshll.u32 %s907_s3, 4  ;;  %s177_s28 = int_to_ptr.vmem [resolvable:$true] %s176_s28  ;;  %s192_s6 = int_to_ptr.hbm [resolvable:$true] %s191_s6 }
   0xa   : > { %p775_p3 = pnand %p464_p0, %p163_p2  ;;  %s713_s7 = smov [#allocation7]  }
   0xb   : > { %s193_s8 = sshll.u32 %s713_s7, 4  ;;  %s714_s9 = smov 128   ;;  %s194_s8 = int_to_ptr.vmem [resolvable:$true] %s193_s8 }
   0xc   : > { %p491_p4 = pneg %p775_p3  ;;  %s715_s10 = smov 8  }
   0xd   : > { %s463_s11 = sadd.s32 4294967294, %s710_s21   ;;  %s789_s12 = sadd.s32 1, %s710_s21  }
   0xe   : > { %p492_p6 = pnand %p491_p4, %p43_p1  ;;  %s26_s13 = ssub.s32 %s710_s21, %s789_s12 }
   0xf   : > { %s29_s14 = sadd.s32 1, %s706_s20  ;;  %p27_p7 = scmp.eq.s32.totalorder %s26_s13, 0 }
  0x10   : > { %494 = dma.hbm_to_vmem [thread:$0]  (!%p492_p6), %s175_s24, 2048, %s177_s28, [#allocation6], %s714_s9, %s714_s9, %s715_s10  }
  0x11   : > { %497 = dma.hbm_to_vmem [thread:$0]  (!%p492_p6), %s192_s6, 2048, %s194_s8, [#allocation6], %s714_s9, %s714_s9, %s715_s10  }
  0x12   : > { %p36_p8 = scmp.ne.s32.totalorder %s706_s20, %s702_s19  ;;  %p37_p9 = scmp.eq.s32.totalorder %s710_s21, 0 }
  0x13   : > { %p42_p10 = scmp.ne.s32.totalorder %s702_s19, %s698_s18  ;;  %p150_p13 = scmp.eq.s32.totalorder %s770_s25, 1 }
  0x14   : > { %s800_s15 = scalar_select %p27_p7, %s706_s20, %s29_s14  }
  0x15   : > { %p802_p11 = por %p37_p9, %p36_p8  ;;  %p808_p12 = por %p43_p1, %p42_p10 }
  0x16   : > { %p156_p0 = scmp.eq.s32.totalorder %s463_s11, 1  ;;  %p508_p2 = scmp.lt.s32.totalorder %s710_s21, 2 }
  0x17   : > { %s210_s22 = sand.u32 1, %s706_s20   ;;  %p815_p4 = por %p150_p13, %p36_p8 }
  0x18   : > { %p819_p6 = por %p156_p0, %p42_p10  ;;  %s468_s27 = sshll.u32 %s210_s22, 3 }
  0x19   : > { %s469_s28 = sshll.u32 %s710_s21, 3  ;;  %s214_s7 = scalar_lea.vmem [#allocation2], %s468_s27 }
  0x1a   : > { %s218_s6 = scalar_lea.hbm %s904_s0, %s469_s28  ;;  %s222_s8 = sshll.u32 %s214_s7, 4  ;;  %s223_s8 = int_to_ptr.vmem [resolvable:$true] %s222_s8 }
  0x1b   : > { %s220_s9 = sshll.u32 %s218_s6, 4  ;;  %p829_p7 = pnand %p508_p2, %p802_p11  ;;  %s221_s9 = int_to_ptr.hbm [resolvable:$true] %s220_s9 }
  0x1c   : > { %s211_s11 = scalar_lea.sflag [#allocation3], %s210_s22  ;;  %s610_s13 = sshra.s32 %s221_s9, 4  ;;  %s611_s13 = int_to_ptr.hbm [resolvable:$true] %s610_s13 }
  0x1d   : > { %s612_s14 = scalar_lea.hbm %s611_s13, 8  ;;  %p614_p9 = pneg %p829_p7 }
  0x1e   : > { %p613_p8 = scmp.ne.s32.totalorder %s611_s13, %s612_s14  ;;  %s617_s29 = scalar_lea.hbm %s904_s0, 16 }
  0x1f   : > { %p618_p11 = scmp.lt.s32.totalorder %s611_s13, %s904_s0  ;;  %p619_p0 = scmp.lt.s32.totalorder %s617_s29, %s612_s14 }
  0x20   : > { %p615_p10 = pnand %p614_p9, %p613_p8 }
  0x21   : > { %p620_p2 = por %p619_p0, %p618_p11 }
  0x22   : > { %p616_p13 = pneg %p615_p10 }
  0x24   : > { %p621_p5 = pnand %p620_p2, %p616_p13 }
  0x26   : > { %624 = shalt.err (!%p621_p5)
}
  0x27   : > { %501 = dma.hbm_to_vmem [thread:$0]  (!%p829_p7), %s221_s9, 128, %s223_s8, %s211_s11  }
  0x28   : > { %231 = sbr.rel (%p775_p3) target bundleno = 341 (0x155), region = 40  ;;  %s846_s22 = sand.u32 (!%p775_p3), 1, %s702_s19  }
  0x29   : > { %s471_s6 = sshll.u32 (!%p775_p3), %s846_s22, 3  ;;  %s234_s7 = scalar_lea.sflag (!%p775_p3), [#allocation3], %s846_s22 }
  0x2a   : > { %s852_s13 = scalar_lea.vmem (!%p775_p3), [#allocation2], %s471_s6 }
  0x2d   : > { %685 = dma.done.wait (%p808_p12), %s234_s7, 128  }
  0x2e   : > { %687 = vsyncadd (%p808_p12), %s234_s7, 4294967168 }
  0x2f   : > { %689 = dma.done.wait (%p43_p1), [#allocation6], 4096  }
  0x30   : > { %691 = vsyncadd (%p43_p1), [#allocation6], 4294963200  ;;  %v291_v0 = vld [vmem:[#allocation5 + $0x78] sm:$0xff]  ;;  %v290_v1 = vld [vmem:[#allocation5 + $0x70] sm:$0xff]  ;;  %s476_s8 = sshll.u32 %s770_s25, 3  ;;  %s274_s28 = scalar_lea.vmem [#allocation8], %s471_s6 }
  0x31   : > { %296 = vmatpush.msra.mxu0 %v291_v0  ;;  %v289_v2 = vld [vmem:[#allocation5 + $0x68] sm:$0xff]  ;;  %v288_v3 = vld [vmem:[#allocation5 + $0x60] sm:$0xff]  ;;  %v332_v4 = vld [vmem:[#allocation7 + $0x78] sm:$0xff]  ;;  %s369_s11 = scalar_lea.hbm %s909_s5, %s476_s8  ;;  %s371_s29 = sshll.u32 %s274_s28, 4  ;;  %s372_s29 = int_to_ptr.vmem [resolvable:$true] %s371_s29 }
  0x32   : > { %v287_v5 = vld [vmem:[#allocation5 + $0x58] sm:$0xff]  ;;  %337 = vmatpush.msra.mxu1 %v332_v4  ;;  %v331_v6 = vld [vmem:[#allocation7 + $0x70] sm:$0xff]  ;;  %v330_v7 = vld [vmem:[#allocation7 + $0x68] sm:$0xff]  ;;  %s373_s30 = sshll.u32 %s369_s11, 4  ;;  %s359_s16 = scalar_lea.sflag [#allocation4], %s846_s22  ;;  %s374_s30 = int_to_ptr.hbm [resolvable:$true] %s373_s30 }
  0x33   : > { %297 = vmatpush.msra.mxu0 %v290_v1  ;;  %v286_v8 = vld [vmem:[#allocation5 + $0x50] sm:$0xff]  ;;  %v329_v9 = vld [vmem:[#allocation7 + $0x60] sm:$0xff]  ;;  %v285_v10 = vld [vmem:[#allocation5 + $0x48] sm:$0xff]  ;;  %s654_s25 = sshra.s32 %s374_s30, 4  ;;  %s660_s17 = scalar_lea.hbm %s909_s5, 16  ;;  %s655_s25 = int_to_ptr.hbm [resolvable:$true] %s654_s25 }
  0x34   : > { %338 = vmatpush.msra.mxu1 %v331_v6  ;;  %v328_v11 = vld [vmem:[#allocation7 + $0x58] sm:$0xff]  ;;  %v284_v12 = vld [vmem:[#allocation5 + $0x40] sm:$0xff]  ;;  %v327_v13 = vld [vmem:[#allocation7 + $0x50] sm:$0xff]  ;;  %s656_s7 = scalar_lea.hbm %s655_s25, 8  ;;  %p661_p12 = scmp.lt.s32.totalorder %s655_s25, %s909_s5 }
  0x35   : > { %298 = vmatpush.msra.mxu0 %v289_v2  ;;  %v283_v14 = vld [vmem:[#allocation5 + $0x38] sm:$0xff]  ;;  %v326_v15 = vld [vmem:[#allocation7 + $0x48] sm:$0xff]  ;;  %v282_v16 = vld [vmem:[#allocation5 + $0x30] sm:$0xff]  ;;  %p657_p1 = scmp.ne.s32.totalorder %s655_s25, %s656_s7  ;;  %p662_p7 = scmp.lt.s32.totalorder %s660_s17, %s656_s7 }
  0x36   : > { %339 = vmatpush.msra.mxu1 %v330_v7  ;;  %v325_v17 = vld [vmem:[#allocation7 + $0x40] sm:$0xff]  ;;  %v281_v18 = vld [vmem:[#allocation5 + $0x28] sm:$0xff]  ;;  %v324_v19 = vld [vmem:[#allocation7 + $0x38] sm:$0xff] }
  0x37   : > { %299 = vmatpush.msra.mxu0 %v288_v3  ;;  %v280_v20 = vld [vmem:[#allocation5 + $0x20] sm:$0xff]  ;;  %v323_v21 = vld [vmem:[#allocation7 + $0x30] sm:$0xff]  ;;  %v279_v22 = vld [vmem:[#allocation5 + $0x18] sm:$0xff]  ;;  %p658_p3 = pnand %p657_p1, %p815_p4  ;;  %p663_p8 = por %p662_p7, %p661_p12 }
  0x38   : > { %340 = vmatpush.msra.mxu1 %v329_v9  ;;  %v322_v23 = vld [vmem:[#allocation7 + $0x28] sm:$0xff]  ;;  %v278_v24 = vld [vmem:[#allocation5 + $0x10] sm:$0xff]  ;;  %v321_v25 = vld [vmem:[#allocation7 + $0x20] sm:$0xff] }
  0x39   : > { %300 = vmatpush.msra.mxu0 %v287_v5  ;;  %v277_v26 = vld [vmem:[#allocation5 + $0x8] sm:$0xff]  ;;  %v320_v27 = vld [vmem:[#allocation7 + $0x18] sm:$0xff]  ;;  %v276_v28 = vld [vmem:[#allocation5] sm:$0xff]  ;;  %p659_p5 = pneg %p658_p3 }
  0x3a   : > { %341 = vmatpush.msra.mxu1 %v328_v11  ;;  %v275_v29 = vld [vmem:[%s852_s13] sm:$0xff]  ;;  %v318_v31 = vld [vmem:[#allocation7 + $0x8] sm:$0xff]  ;;  %v317_v32 = vld [vmem:[#allocation7] sm:$0xff] }
  0x3b   : > { %301 = vmatpush.msra.mxu0 %v286_v8  ;;  %v319_v30 = vld [vmem:[#allocation7 + $0x10] sm:$0xff]  ;;  %p664_p9 = pnand %p663_p8, %p659_p5 }
  0x3c   : > { %342 = vmatpush.msra.mxu1 %v327_v13  ;;  %v548_v33 = vld [vmem:[%s906_s2] ss:$0 sm:$0xff] }
  0x3d   : > { %302 = vmatpush.msra.mxu0 %v285_v10  ;;  %v549_v37 = vld [vmem:[%s908_s4] ss:$0 sm:$0xff] }
  0x3e   : > { %343 = vmatpush.msra.mxu1 %v326_v15 }
  0x3f   : > { %303 = vmatpush.msra.mxu0 %v284_v12 }
  0x40   : > { %344 = vmatpush.msra.mxu1 %v325_v17 }
  0x41   : > { %304 = vmatpush.msra.mxu0 %v283_v14 }
  0x42   : > { %345 = vmatpush.msra.mxu1 %v324_v19 }
  0x43   : > { %305 = vmatpush.msra.mxu0 %v282_v16 }
  0x44   : > { %346 = vmatpush.msra.mxu1 %v323_v21 }
  0x45   : > { %306 = vmatpush.msra.mxu0 %v281_v18 }
  0x46   : > { %347 = vmatpush.msra.mxu1 %v322_v23 }
  0x47   : > { %307 = vmatpush.msra.mxu0 %v280_v20 }
  0x48   : > { %348 = vmatpush.msra.mxu1 %v321_v25 }
  0x49   : > { %308 = vmatpush.msra.mxu0 %v279_v22 }
  0x4a   : > { %349 = vmatpush.msra.mxu1 %v320_v27 }
  0x4b   : > { %309 = vmatpush.msra.mxu0 %v278_v24 }
  0x4c   : > { %350 = vmatpush.msra.mxu1 %v319_v30 }
  0x4d   : > { %310 = vmatpush.msra.mxu0 %v277_v26 }
  0x4e   : > { %351 = vmatpush.msra.mxu1 %v318_v31 }
  0x4f   : > { %311 = vmatpush.msra.mxu0 %v276_v28 }
  0x50   : > { %312 = vmatmul.f32.vlgmr.msra.gmra.mxu0 %v275_v29  ;;  %352 = vmatpush.msra.mxu1 %v317_v32 }
  0xcd   : > { %v313_v34 = vpop.f32.mrf.mxu0 }
  0xce   : > { %v314_v35 = vadd.f32 %v548_v33, %v313_v34 }
  0xd0   : > { %v316_v36 = vmax.f32 %v314_v35, 0.0 }
  0xd2   : > { %353 = vmatmul.f32.vlgmr.msra.gmra.mxu1 %v316_v36 }
 0x14f   : > { %v354_v38 = vpop.f32.mrf.mxu1 }
 0x150   : > { %v355_v39 = vadd.f32 %v549_v37, %v354_v38 }
 0x152   : > { %357 = vst [vmem:[%s274_s28] sm:$0xff] %v355_v39 }
 0x153   : > { %667 = shalt.err (!%p664_p9)
}
 0x154   : > { %489 = dma.vmem_to_hbm [thread:$0]  (%p815_p4), %s372_s29, 128, %s374_s30, %s359_s16  }
 0x155 PF: > { %s385_s22 = sand.u32 1, %s698_s18   ;;  %p916_p10 = scmp.ge.s32.totalorder %s710_s21, 2 }
 0x156   : > { %s386_s9 = scalar_lea.sflag [#allocation4], %s385_s22 }
 0x157   : > { %p503_p13 = pnand %p916_p10, %p819_p6 }
 0x159   : > { %p504_p11 = pneg %p503_p13 }
 0x15b   : > { %693 = dma.done.wait (%p504_p11), %s386_s9, 128  }
 0x15c   : > { %695 = vsyncadd (%p504_p11), %s386_s9, 4294967168  ;;  %p19_p0 = scmp.ge.s32.totalorder %s789_s12, 4   ;;  %s917_s18 = smov %s702_s19 }
 0x15d   : > { %s918_s19 = smov %s706_s20  ;;  %s919_s20 = smov %s800_s15 }
 0x15e   : > { %s920_s21 = smov %s789_s12  ;;  %21 = sbr.rel (!%p19_p0) target bundleno = 6 (0x6), region = 93 }
 0x163   :  { %392 = vsyncpa [#allocation3], 1 }
 0x164   :  { %394 = vsyncpa [#allocation3 + $0x1], 1 }
 0x165   :  { %395 = vsyncpa [#allocation6], 1 }
 0x166   :  { %396 = vsyncpa [#allocation4], 1 }
 0x167   :  { %398 = vsyncpa [#allocation4 + $0x1], 1 }

</bundles_post_ra>
